<compile_context>
chip_gen: v6e
topology: v6e:2x2x1
jax: 0.10.0
libtpu: 0.0.40
codegen_flags: <defaults>
</compile_context>

<pallas_src>
import functools

import jax
import jax.numpy as jnp
from jax.experimental import pallas as pl
from jax.experimental.pallas import tpu as pltpu


def _round_up(x, m):
    return ((x + m - 1) // m) * m


def _vmem_capacity_bytes():
    try:
        return int(pltpu.get_tpu_info().vmem_capacity_bytes)
    except Exception:
        return 64 * 1024 * 1024   # conservative fallback: v7x physical VMEM


def _logic_kernel(x_ref, w_ref, b_ref, o_ref, *, compute_dtype):
    # x_ref: (tm, H) native dtype; w_ref: (H, tn) pre-transposed W^T in compute
    # dtype; b_ref: (1, tn) f32; o_ref: (tm, tn) output dtype.
    x = x_ref[...].astype(compute_dtype)   # per-tile cast (no wrapper HBM pass)
    b = b_ref[...]                          # hoisted once
    acc = jnp.dot(x, w_ref[...], preferred_element_type=jnp.float32)
    o_ref[...] = jnp.maximum(acc + b, 0.0).astype(o_ref.dtype)


@functools.partial(jax.jit, static_argnames=("compute_dtype", "block_m", "out_dtype"))
def logical_transformer_layer(x, weight, bias, *,
                              compute_dtype=jnp.bfloat16,
                              block_m=1024,
                              out_dtype=None):
    """x: (B, S, H); weight: (H, H) PyTorch layout [out, in]; bias: (H,)."""
    B, S, H = x.shape
    M = B * S
    x2d = x.reshape(M, H)
    out_dtype = x.dtype if out_dtype is None else out_dtype

    xb = jnp.dtype(x.dtype).itemsize
    cb = jnp.dtype(compute_dtype).itemsize
    ob = jnp.dtype(out_dtype).itemsize

    cap = _vmem_capacity_bytes()            # 128 MiB v5e/v6e, 64 MiB v7x
    budget = int(cap * 0.85)                # ~108 MiB / ~54 MiB usable budget

    # One-time weight transpose + cast in the wrapper (canonical contraction in
    # the kernel => no per-grid-step in-VMEM transpose of the (H, H) tile).
    w_t = weight.astype(compute_dtype).T            # (in, out)
    b2d = bias.astype(jnp.float32).reshape(1, H)

    kernel = functools.partial(_logic_kernel, compute_dtype=compute_dtype)
    flops = 2 * M * H * H

    # Honest per-row VMEM for a streamed (tm, H) tile: double-buffered native
    # input + double-buffered output + one in-kernel cast temporary.
    per_row = 2 * H * xb + 2 * H * ob + H * cb
    # Resident weight/bias are still double-buffered by default -> count 2x.
    w_resident = 2 * H * H * cb + 2 * H * 4

    resident_ok = w_resident <= int(0.7 * budget)
    if resident_ok:
        tm_fit = (budget - w_resident) // per_row
        resident_ok = tm_fit >= 16

    if resident_ok:
        # ---------------- resident-weight path ----------------
        tm = min(block_m, int(tm_fit), _round_up(M, 16))
        if M >= 512:   # keep >= 2 M blocks so v7x's second TensorCore has work
            tm = min(tm, _round_up(pl.cdiv(M, 2), 256))
        tm = (tm // 256) * 256 if tm >= 256 else max(16, (tm // 16) * 16)

        grid = (pl.cdiv(M, tm),)
        in_specs = [
            pl.BlockSpec((tm, H), lambda i: (i, 0)),    # streamed x tiles
            pl.BlockSpec((H, H), lambda i: (0, 0)),     # resident W^T
            pl.BlockSpec((1, H), lambda i: (0, 0)),     # resident bias
        ]
        out_specs = pl.BlockSpec((tm, H), lambda i: (i, 0))
        dims = ("parallel",)
        vmem_need = w_resident + tm * per_row
        bytes_accessed = M * H * xb + H * H * cb + H * 4 + M * H * ob
    else:
        # ---------------- N-tiled fallback (large H) ----------------
        tn = 512 if H >= 512 else _round_up(H, 128)
        w_tile = 2 * H * tn * cb + 2 * tn * 4           # streamed W^T columns
        per_row_t = 2 * H * xb + H * cb + 2 * tn * ob
        tm_fit = max((budget - w_tile) // per_row_t, 16)
        tm = min(512, int(tm_fit), _round_up(M, 16))
        if M >= 512:
            tm = min(tm, _round_up(pl.cdiv(M, 2), 256))
        tm = (tm // 256) * 256 if tm >= 256 else max(16, (tm // 16) * 16)

        # Outer axis over N => the (H, tn) weight block is constant along the
        # inner M axis and is DMA'd only once per column block.
        grid = (pl.cdiv(H, tn), pl.cdiv(M, tm))
        in_specs = [
            pl.BlockSpec((tm, H), lambda n, m: (m, 0)),
            pl.BlockSpec((H, tn), lambda n, m: (0, n)),
            pl.BlockSpec((1, tn), lambda n, m: (0, n)),
        ]
        out_specs = pl.BlockSpec((tm, tn), lambda n, m: (m, n))
        dims = ("parallel", "parallel")
        vmem_need = w_tile + tm * per_row_t
        bytes_accessed = (pl.cdiv(H, tn) * M * H * xb + H * H * cb + H * 4
                          + M * H * ob)

    # Explicit scoped-VMEM limit: actual need + margin, never exactly at the
    # physical cap (leave ~2 MiB for Mosaic internal scratch).
    vmem_limit = int(min(max(vmem_need + (4 << 20), 32 << 20), cap - (2 << 20)))

    out2d = pl.pallas_call(
        kernel,
        out_shape=jax.ShapeDtypeStruct((M, H), out_dtype),
        grid_spec=pltpu.PrefetchScalarGridSpec(
            num_scalar_prefetch=0,
            grid=grid,
            in_specs=in_specs,
            out_specs=out_specs,
        ),
        compiler_params=pltpu.CompilerParams(
            dimension_semantics=dims,
            vmem_limit_bytes=vmem_limit,
        ),
        cost_estimate=pl.CostEstimate(
            flops=flops, transcendentals=0, bytes_accessed=int(bytes_accessed)),
    )(x2d, w_t, b2d)

    return out2d.reshape(B, S, H)


if __name__ == "__main__":
    key = jax.random.PRNGKey(0)
    B, S, H = 2, 8, 32
    kx, kw, kb = jax.random.split(key, 3)
    x = jax.random.normal(kx, (B, S, H), dtype=jnp.float32)
    # Deterministic init mimicking nn.Linear's uniform(-1/sqrt(H), 1/sqrt(H))
    bound = 1.0 / jnp.sqrt(jnp.float32(H))
    weight = jax.random.uniform(kw, (H, H), minval=-bound, maxval=bound,
                                dtype=jnp.float32)
    bias = jax.random.uniform(kb, (H,), minval=-bound, maxval=bound,
                              dtype=jnp.float32)

    # Reference: F.relu(F.linear(x, W, b)) == relu(x @ W^T + b)
    ref = jnp.maximum(jnp.einsum("bsh,oh->bso", x, weight) + bias, 0.0)

    # f32 compute path: tight tolerance.
    out_f32 = logical_transformer_layer(x, weight, bias,
                                        compute_dtype=jnp.float32)
    jax.block_until_ready(out_f32)
    assert out_f32.shape == (B, S, H)
    assert jnp.allclose(out_f32, ref, atol=1e-5, rtol=1e-5)

    # Default bf16 compute path (f32 accumulation): looser tolerance.
    # NOTE: intentional semantic deviation from the f32 PyTorch layer.
    out_bf16 = logical_transformer_layer(x, weight, bias)
    jax.block_until_ready(out_bf16)
    assert out_bf16.shape == (B, S, H)
    assert jnp.allclose(out_bf16, ref, atol=3e-2, rtol=3e-2)

    print("KERNEL_OK")
</pallas_src>

<mosaic_0001>
module attributes {stable_mosaic.version = 11 : i64} {
  func.func @_logic_kernel(%arg0: i32, %arg1: memref<16x32xf32, #tpu.memory_space<vmem>>, %arg2: memref<32x32xf32, #tpu.memory_space<vmem>>, %arg3: memref<1x32xf32, #tpu.memory_space<vmem>>, %arg4: memref<16x32xf32, #tpu.memory_space<vmem>>) attributes {dimension_semantics = [#tpu.dimension_semantics<parallel>], iteration_bounds = array<i64: 1>, scalar_prefetch = 0 : i64, scratch_operands = 0 : i64, tpu.core_type = #tpu.core_type<tc>, window_params = [{transform_indices = @transform_0, window_bounds = array<i64: 16, 32>}, {pipeline_mode = #tpu.pipeline_mode<synchronous>, transform_indices = @transform_1, window_bounds = array<i64: 32, 32>}, {pipeline_mode = #tpu.pipeline_mode<synchronous>, transform_indices = @transform_2, window_bounds = array<i64: 1, 32>}, {transform_indices = @transform_3, window_bounds = array<i64: 16, 32>}]} {
    %c0 = arith.constant 0 : index
    %c0_0 = arith.constant 0 : index
    %0 = vector.load %arg1[%c0, %c0_0] : memref<16x32xf32, #tpu.memory_space<vmem>>, vector<16x32xf32>
    %c0_1 = arith.constant 0 : index
    %c0_2 = arith.constant 0 : index
    %1 = vector.load %arg3[%c0_1, %c0_2] : memref<1x32xf32, #tpu.memory_space<vmem>>, vector<1x32xf32>
    %c0_3 = arith.constant 0 : index
    %c0_4 = arith.constant 0 : index
    %2 = vector.load %arg2[%c0_3, %c0_4] : memref<32x32xf32, #tpu.memory_space<vmem>>, vector<32x32xf32>
    %cst = arith.constant dense<0.000000e+00> : vector<16x32xf32>
    %3 = tpu.matmul %0, %2, %cst {dimension_numbers = #tpu.dot_dimension_numbers<[1], [0], [0], [1], [0, 0, 1, 1], [], []>} : vector<16x32xf32>, vector<32x32xf32>, vector<16x32xf32> -> vector<16x32xf32>
    %4 = vector.broadcast %1 : vector<1x32xf32> to vector<16x32xf32>
    %5 = arith.addf %3, %4 : vector<16x32xf32>
    %cst_5 = arith.constant 0.000000e+00 : f32
    %6 = vector.broadcast %cst_5 : f32 to vector<16x32xf32>
    %7 = arith.maximumf %5, %6 : vector<16x32xf32>
    %c0_6 = arith.constant 0 : index
    %c0_7 = arith.constant 0 : index
    %8 = vector.load %arg4[%c0_6, %c0_7] : memref<16x32xf32, #tpu.memory_space<vmem>>, vector<16x32xf32>
    tpu.vector_store %arg4[%c0_6, %c0_7], %7 {strides = array<i32>} : memref<16x32xf32, #tpu.memory_space<vmem>>, vector<16x32xf32>,
    return
  }
  func.func @transform_0(%arg0: i32) -> (i32, i32) {
    %c0_i32 = arith.constant 0 : i32
    %c0_i32_0 = arith.constant 0 : i32
    return %arg0, %c0_i32 : i32, i32
  }
  func.func @transform_1(%arg0: i32) -> (i32, i32) {
    %c0_i32 = arith.constant 0 : i32
    %c0_i32_0 = arith.constant 0 : i32
    %c0_i32_1 = arith.constant 0 : i32
    return %c0_i32, %c0_i32_0 : i32, i32
  }
  func.func @transform_2(%arg0: i32) -> (i32, i32) {
    %c0_i32 = arith.constant 0 : i32
    %c0_i32_0 = arith.constant 0 : i32
    %c0_i32_1 = arith.constant 0 : i32
    return %c0_i32, %c0_i32_0 : i32, i32
  }
  func.func @transform_3(%arg0: i32) -> (i32, i32) {
    %c0_i32 = arith.constant 0 : i32
    %c0_i32_0 = arith.constant 0 : i32
    return %arg0, %c0_i32 : i32, i32
  }
}

</mosaic_0001>

<bundles_post_ra>
// kernel: logical_transformer_layer.1
= control target key start
LH: loop header
LB: loop body
LE: loop exit
PB: predicated region body
PF: predicated region fallthrough
CT: control target
= control target key end

     0   :  { %vm28_vm0 = vcmask 261120   ;;  %s226_s0 = inlined_call_operand.vmem [shape: f32[16,32], index: 0, kind: input, shape index: {}]   ;;  %s227_s1 = inlined_call_operand.vmem [shape: f32[32,32], index: 1, kind: input, shape index: {}]   ;;  %s228_s2 = inlined_call_operand.vmem [shape: f32[1,32], index: 2, kind: input, shape index: {}]   ;;  %s229_s3 = inlined_call_operand.hbm [shape: f32[16,32], index: 3, kind: output, shape index: {}]  }
   0x1   :  { %v21_v0 = vld [vmem:[%s227_s1 + $0x18] sm:$0xff]  ;;  %v20_v1 = vld [vmem:[%s227_s1 + $0x10] sm:$0xff]  ;;  %v15_v2 = vld [vmem:[%s226_s0] sm:$0xff] }
   0x2   :  { %139 = vmatprep.subr.mxu0 %v21_v0  ;;  %v19_v3 = vld [vmem:[%s227_s1 + $0x8] sm:$0xff]  ;;  %147 = vmatprep.mubr.msk.f32.mxu0 %vm28_vm0, %v15_v2 }
   0x3   :  { %140 = vmatpush3.msra.mxu0 %v21_v0 }
   0x4   :  { %8 = vsyncpa [#allocation3], 0  ;;  %141 = vmatprep.subr.mxu0 %v20_v1  ;;  %v18_v4 = vld [vmem:[%s227_s1] sm:$0xff]  ;;  %v16_v5 = vld [vmem:[%s226_s0 + $0x8] sm:$0xff]  ;;  %s175_s26 = smov [#allocation2]  }
   0x5   :  { %142 = vmatpush3.msra.mxu0 %v20_v1  ;;  %v130_v6 = vld [vmem:[%s228_s2] ss:$0 sm:$0xff]  ;;  %s119_s27 = sshll.u32 %s175_s26, 4  ;;  %s120_s27 = int_to_ptr.vmem [resolvable:$true] %s119_s27 }
   0x6   :  { %143 = vmatprep.subr.mxu0 %v19_v3  ;;  %s153_s0 = scalar_lea.vmem %s120_s27, 256  ;;  %p158_p1 = scmp.lt.s32.totalorder %s120_s27, %s120_s27 }
   0x7   :  { %144 = vmatpush3.msra.mxu0 %v19_v3  ;;  %p154_p0 = scmp.ne.s32.totalorder %s120_s27, %s153_s0  ;;  %p159_p2 = scmp.lt.s32.totalorder %s153_s0, %s153_s0 }
   0x8   :  { %145 = vmatprep.subr.mxu0 %v18_v4 }
   0x9   :  { %146 = vmatpush3.msra.mxu0 %v18_v4  ;;  %p160_p3 = por %p159_p2, %p158_p1 }
   0xa   :  { %148 = vmatmul.mubr.msk.f32.vlgmr.msra.gmra.mxu0 %vm28_vm0, %v16_v5 }
   0xb   :  { %p161_p4 = pnand %p160_p3, %p154_p0 }
  0xca   :  { %v149_v7 = vpop.f32.mrf.mxu0 }
  0xcb   :  { %v107_v8 = vadd.f32 %v149_v7, %v130_v6 }
  0xcc   :  { %v101_v9 = vpop.f32.mrf.mxu0 }
  0xcd   :  { %v111_v10 = vmax.f32 %v107_v8, 0.0  ;;  %v102_v11 = vadd.f32 %v130_v6, %v101_v9 }
  0xcf   :  { %113 = vst.msk [vmem:[#allocation2 + $0x8] sm:$0xff] %vm28_vm0, %v111_v10  ;;  %v110_v12 = vmax.f32 %v102_v11, 0.0 }
  0xd1   :  { %112 = vst.msk [vmem:[#allocation2] sm:$0xff] %vm28_vm0, %v110_v12 }
  0xd2   :  { %164 = shalt.err (!%p161_p4)
}
  0xd3   :  { %s176_s1 = smov 128   ;;  %s177_s2 = smov 8  }
  0xd4   :  { %125 = dma.vmem_to_hbm [thread:$0]  %s120_s27, 256, %s229_s3, [#allocation3], %s176_s1, %s176_s1, %s177_s2  }
  0xd5   :  { %173 = dma.done.wait [#allocation3], 256  }
  0xd6   :  { %174 = vsyncadd [#allocation3], 4294967040 }
  0xd7   :  { %129 = vsyncpa [#allocation3], 1 }

</bundles_post_ra>
